<compile_context>
chip_gen: v5e
topology: v5e:2x2
jax: 0.10.0
libtpu: 0.0.40
codegen_flags: <defaults>
</compile_context>

<pallas_src>
import math

import jax
import jax.numpy as jnp
from jax.experimental import pallas as pl
from jax.experimental.pallas import tpu as pltpu


_LANE_CAP = 32768  # widest lane-dense slab we search for (multiple of 128)


def _copy_kernel(x_ref, o_ref):
    # Identity copy of one lane-dense tile (the only "compute" in a reshape).
    o_ref[...] = x_ref[...]


def _tpu_params():
    """Generation-aware block / VMEM / small-copy budgets."""
    vmem_bytes = None
    try:
        info = pltpu.get_tpu_info()
        vmem_bytes = getattr(info, "vmem_capacity_bytes", None)
    except Exception:
        vmem_bytes = None
    if vmem_bytes is None:
        vmem_bytes = 64 * 1024 * 1024  # conservative default: v7x-sized VMEM
    if vmem_bytes >= 128 * 1024 * 1024:
        # v5e / v6e: 128 MiB physical VMEM -> bigger blocks, fewer grid steps.
        return dict(block_bytes=12 << 20, vmem_limit=64 << 20,
                    small_bytes=512 << 10)
    # v7x: 64 MiB physical VMEM; 2-in + 2-out double buffers of 6 MiB = 24 MiB
    # stays well under the 32 MiB limit.  Small copies bypass the kernel up to
    # 2 MiB because at 3.2 TB/s dispatch dominates.
    return dict(block_bytes=6 << 20, vmem_limit=32 << 20, small_bytes=2 << 20)


def _sublane_packing(dtype):
    """Sublane packing factor: 8 for 32-bit, 16 for bf16, 32 for int8/fp8."""
    itemsize = jnp.dtype(dtype).itemsize
    return max(8, 32 // max(1, itemsize))


def _choose_cols(total, max_cols):
    """Largest divisor of `total` that is a multiple of 128 and <= max_cols."""
    c = min(int(max_cols), int(total))
    c = (c // 128) * 128
    while c >= 128:
        if total % c == 0:
            return c
        c -= 128
    return None


def _choose_block_rows(R, max_rows, sub, min_blocks):
    """Block rows: multiple of `sub`, <= max_rows, prefer dividing R exactly,
    and prefer producing at least `min_blocks` grid blocks."""
    max_rows = max(sub, (max_rows // sub) * sub)
    target = -(-R // min_blocks)                    # ceil(R / min_blocks)
    target = max(sub, (target // sub) * sub)
    upper = min(max_rows, target)
    # Search nearby (down to ~75% of upper) for an exact divisor of R so the
    # tail block is not partial; otherwise accept a cdiv tail.
    t = upper
    floor_search = max(sub, (3 * upper) // 4)
    while t >= floor_search:
        if R % t == 0:
            return t
        t -= sub
    return upper


def _pallas_copy_2d(x2, *, params=None, max_block_rows=None, donate=False,
                    core_parallel=False):
    """Tiled identity copy of a row-major 2D array [R, C] through VMEM."""
    params = params or _tpu_params()
    R, C = x2.shape
    itemsize = jnp.dtype(x2.dtype).itemsize
    sub = _sublane_packing(x2.dtype)

    if max_block_rows is None:
        max_block_rows = max(sub, params["block_bytes"] // (C * itemsize))

    # Prefer >=2 grid blocks whenever the row count allows it, so a
    # core-parallel split has work for both TensorCores on v7x.
    min_blocks = 2 if R >= 2 * sub else 1
    if min_blocks == 1 and R <= max_block_rows:
        tb = R  # single block: full sublane extent is always legal
    else:
        tb = _choose_block_rows(R, max_block_rows, sub, min_blocks)

    grid = (pl.cdiv(R, tb),)
    semantics = (pltpu.CORE_PARALLEL,) if core_parallel else ("parallel",)

    extra = {}
    if donate:
        # Aliases the output onto the input buffer (halves HBM footprint,
        # not HBM traffic); only truly in-place when the caller donates x.
        extra["input_output_aliases"] = {0: 0}

    return pl.pallas_call(
        _copy_kernel,
        out_shape=jax.ShapeDtypeStruct((R, C), x2.dtype),
        grid=grid,
        in_specs=[pl.BlockSpec((tb, C), lambda i: (i, 0))],
        out_specs=pl.BlockSpec((tb, C), lambda i: (i, 0)),
        compiler_params=pltpu.CompilerParams(
            dimension_semantics=semantics,
            vmem_limit_bytes=params["vmem_limit"],
        ),
        cost_estimate=pl.CostEstimate(
            flops=0, transcendentals=0, bytes_accessed=2 * R * C * itemsize),
        **extra,
    )(x2)


def _dma_copy_2d(x2, *, chunk_rows=None, ring=4):
    """HBM->HBM copy via chunked async DMA with a small semaphore ring.

    Skips VMEM staging entirely (no vld/vst loop, no double-buffer footprint,
    no per-generation tile tuning); wall-clock stays HBM-bound.
    """
    R, C = x2.shape
    itemsize = jnp.dtype(x2.dtype).itemsize
    if chunk_rows is None:
        chunk_rows = max(1, (4 << 20) // (C * itemsize))  # ~4 MiB chunks
    chunk_rows = max(1, min(int(chunk_rows), R))
    # Prefer a chunk size that evenly divides R (keeps every DMA identical).
    cr = chunk_rows
    while cr > 1 and R % cr != 0:
        cr -= 1
    chunk_rows = cr
    n_chunks = R // chunk_rows
    ring = max(1, min(int(ring), n_chunks))

    x3 = jnp.reshape(x2, (n_chunks, chunk_rows, C))  # metadata-only

    def kernel(x_hbm, o_hbm, sems):
        def start(i, slot):
            pltpu.make_async_copy(x_hbm.at[i], o_hbm.at[i], sems.at[slot]).start()

        def wait(i, slot):
            pltpu.make_async_copy(x_hbm.at[i], o_hbm.at[i], sems.at[slot]).wait()

        # Prime the ring (static, tiny loop).
        for j in range(ring):
            start(j, j)
        # Steady state: wait the oldest copy on this slot, reuse it.
        if n_chunks > ring:
            @pl.loop(ring, n_chunks)
            def _(i):
                slot = i % ring
                wait(i - ring, slot)
                start(i, slot)
        # Drain the last `ring` outstanding copies (static loop).
        for j in range(ring):
            idx = n_chunks - ring + j
            wait(idx, idx % ring)

    y3 = pl.pallas_call(
        kernel,
        out_shape=jax.ShapeDtypeStruct((n_chunks, chunk_rows, C), x2.dtype),
        in_specs=[pl.BlockSpec(memory_space=pl.ANY)],
        out_specs=pl.BlockSpec(memory_space=pl.ANY),
        scratch_shapes=[pltpu.SemaphoreType.DMA((ring,))],
        cost_estimate=pl.CostEstimate(
            flops=0, transcendentals=0, bytes_accessed=2 * R * C * itemsize),
    )(x3)
    return jnp.reshape(y3, (R, C))


def materialized_reshape(x, out_shape, *, method="vmem", force_kernel=False,
                         donate=False, core_parallel=False,
                         max_cols=None, max_block_rows=None,
                         chunk_rows=None, ring=4):
    """Reshape that forces a physical copy via a Pallas kernel when sensible.

    Falls back to metadata-only jnp.reshape for scalars, zero-sized arrays,
    small inputs (generation-aware threshold), or totals with no lane-dense
    (multiple-of-128) factorization.
    """
    total = math.prod(x.shape) if x.shape else 1
    if x.ndim == 0 or total == 0:
        return jnp.reshape(x, out_shape)

    params = _tpu_params()
    itemsize = jnp.dtype(x.dtype).itemsize
    nbytes = total * itemsize
    if not force_kernel and nbytes < params["small_bytes"]:
        return jnp.reshape(x, out_shape)

    sub = _sublane_packing(x.dtype)
    if max_cols is None:
        max_cols = min(_LANE_CAP,
                       max(128, params["block_bytes"] // (sub * itemsize)))
    cols = _choose_cols(total, max_cols)
    if cols is None:
        # A kernel copy here would need masked (vst.msk) partial stores.
        return jnp.reshape(x, out_shape)

    x2 = jnp.reshape(x, (total // cols, cols))  # metadata-only, row-major
    if method == "dma":
        y2 = _dma_copy_2d(x2, chunk_rows=chunk_rows, ring=ring)
    else:
        y2 = _pallas_copy_2d(x2, params=params, max_block_rows=max_block_rows,
                             donate=donate, core_parallel=core_parallel)
    return jnp.reshape(y2, out_shape)            # metadata-only, row-major


class Reshape:
    """JAX/Pallas port of vschaos.modules.Reshape.

    Default path is metadata-only (matches torch.reshape exactly).  Pass
    materialize=True to force a physical copy through a Pallas kernel
    (method="vmem" pipelined copy, or method="dma" HBM->HBM DMA ring).
    """

    def __init__(self, *args, incoming_dim=None, materialize=False):
        self.target_shape = tuple(int(a) for a in args)
        self.incoming_dim = incoming_dim
        self.materialize = materialize

    def __repr__(self):
        return "Reshape%s" % (self.target_shape,)

    def __call__(self, x, batch_shape=None, **kernel_kwargs):
        if batch_shape is None:
            # NOTE: truthiness check matches the original module, so
            # incoming_dim=0 behaves like None (falls back to target length).
            if self.incoming_dim:
                batch_shape = x.shape[: -self.incoming_dim]
            else:
                batch_shape = x.shape[: -len(self.target_shape)]
        batch_shape = tuple(int(b) for b in batch_shape)
        out_shape = batch_shape + self.target_shape

        total_in = math.prod(x.shape) if x.shape else 1
        total_out = math.prod(out_shape) if out_shape else 1
        if total_in != total_out:
            raise ValueError(
                f"cannot reshape array of size {total_in} into shape {out_shape}"
            )

        if not self.materialize:
            # Fast path: free, metadata-only, exact torch.reshape semantics.
            return jnp.reshape(x, out_shape)
        return materialized_reshape(x, out_shape, **kernel_kwargs)


if __name__ == "__main__":
    key = jax.random.PRNGKey(0)
    k1, k2, k3, k4 = jax.random.split(key, 4)

    # 1) Default (metadata-only) path: flattened latent -> conv feature map.
    #    (2, 1024) -> (2, 4, 16, 16) via Reshape(4, 16, 16, incoming_dim=1).
    x = jax.random.normal(k1, (2, 1024), dtype=jnp.float32)
    mod = Reshape(4, 16, 16, incoming_dim=1)
    y = jax.block_until_ready(mod(x))
    ref = jnp.reshape(x, (2, 4, 16, 16))
    assert y.shape == (2, 4, 16, 16) and y.dtype == x.dtype
    assert bool(jnp.array_equal(y, ref))

    # 2) incoming_dim=None path: batch dims inferred from len(target_shape).
    mod_none = Reshape(4, 64)
    y_none = jax.block_until_ready(mod_none(y))
    assert y_none.shape == (2, 4, 4, 64)
    assert bool(jnp.array_equal(y_none, jnp.reshape(x, (2, 4, 4, 64))))

    # 3) Inverse reshape back to the flat latent: (2, 4, 16, 16) -> (2, 1024).
    mod_inv = Reshape(1024, incoming_dim=3)
    x_back = jax.block_until_ready(mod_inv(y))
    assert x_back.shape == (2, 1024)
    assert bool(jnp.array_equal(x_back, x))

    # 4) Materialized VMEM path (single lane-dense block) + aliased variant.
    mod_copy = Reshape(4, 16, 16, incoming_dim=1, materialize=True)
    yk = jax.block_until_ready(mod_copy(x, force_kernel=True))
    assert yk.shape == (2, 4, 16, 16) and yk.dtype == x.dtype
    assert bool(jnp.array_equal(yk, ref))
    xd = jnp.array(x)  # fresh buffer for the aliased (donate-capable) copy
    yd = jax.block_until_ready(mod_copy(xd, force_kernel=True, donate=True))
    assert bool(jnp.array_equal(yd, ref))

    # 5) Materialized path with a multi-block grid (tiny tiles only to
    #    exercise the index_map; production defaults use large tiles).
    x3 = jax.random.normal(k2, (2, 8, 16, 16), dtype=jnp.float32)  # 4096 elems
    mod3 = Reshape(2048, incoming_dim=3, materialize=True)
    y3 = jax.block_until_ready(
        mod3(x3, force_kernel=True, max_cols=128, max_block_rows=8)
    )  # -> flat view (32, 128), block (8, 128), grid (4,)
    assert y3.shape == (2, 2048)
    assert bool(jnp.array_equal(y3, jnp.reshape(x3, (2, 2048))))

    # 6) bf16 materialized path: sublane packing factor 16 -> block (16, 128).
    x_bf = jax.random.normal(k3, (4, 32, 32), dtype=jnp.bfloat16)
    mod_bf = Reshape(1024, incoming_dim=2, materialize=True)
    y_bf = jax.block_until_ready(mod_bf(x_bf, force_kernel=True, max_cols=128))
    assert y_bf.shape == (4, 1024) and y_bf.dtype == jnp.bfloat16
    assert bool(jnp.array_equal(y_bf, jnp.reshape(x_bf, (4, 1024))))

    # 7) HBM->HBM DMA-ring path: (2, 16, 128) -> (2, 2048); 4 chunks, ring=2
    #    exercises prime / steady-state / drain phases.
    x_dma = jax.random.normal(k4, (2, 16, 128), dtype=jnp.float32)
    mod_dma = Reshape(2048, incoming_dim=2, materialize=True)
    y_dma = jax.block_until_ready(
        mod_dma(x_dma, force_kernel=True, method="dma",
                max_cols=128, chunk_rows=8, ring=2)
    )
    assert y_dma.shape == (2, 2048)
    assert bool(jnp.array_equal(y_dma, jnp.reshape(x_dma, (2, 2048))))

    print("KERNEL_OK")
</pallas_src>

<mosaic_0001>
module attributes {stable_mosaic.version = 11 : i64} {
  func.func @_copy_kernel(%arg0: i32, %arg1: memref<1x2048xf32, #tpu.memory_space<vmem>>, %arg2: memref<1x2048xf32, #tpu.memory_space<vmem>>) attributes {dimension_semantics = [#tpu.dimension_semantics<parallel>], iteration_bounds = array<i64: 1>, scalar_prefetch = 0 : i64, scratch_operands = 0 : i64, tpu.core_type = #tpu.core_type<tc>, window_params = [{transform_indices = @transform_0, window_bounds = array<i64: 1, 2048>}, {transform_indices = @transform_1, window_bounds = array<i64: 1, 2048>}]} {
    %c0 = arith.constant 0 : index
    %c0_0 = arith.constant 0 : index
    %0 = vector.load %arg1[%c0, %c0_0] : memref<1x2048xf32, #tpu.memory_space<vmem>>, vector<1x2048xf32>
    %c0_1 = arith.constant 0 : index
    %c0_2 = arith.constant 0 : index
    %1 = vector.load %arg2[%c0_1, %c0_2] : memref<1x2048xf32, #tpu.memory_space<vmem>>, vector<1x2048xf32>
    tpu.vector_store %arg2[%c0_1, %c0_2], %0 {strides = array<i32>} : memref<1x2048xf32, #tpu.memory_space<vmem>>, vector<1x2048xf32>,
    return
  }
  func.func @transform_0(%arg0: i32) -> (i32, i32) {
    %c0_i32 = arith.constant 0 : i32
    %c0_i32_0 = arith.constant 0 : i32
    return %arg0, %c0_i32 : i32, i32
  }
  func.func @transform_1(%arg0: i32) -> (i32, i32) {
    %c0_i32 = arith.constant 0 : i32
    %c0_i32_0 = arith.constant 0 : i32
    return %arg0, %c0_i32 : i32, i32
  }
}

</mosaic_0001>

<bundles_post_ra>
// kernel: tpu_custom_call.1
= control target key start
LH: loop header
LB: loop body
LE: loop exit
PB: predicated region body
PF: predicated region fallthrough
CT: control target
= control target key end

     0   :  { %6 = vsyncpa [#allocation3], 0  ;;  %s116_s0 = inlined_call_operand.hbm [shape: f32[1,2048], index: 0, kind: input, shape index: {}]   ;;  %s117_s1 = inlined_call_operand.hbm [shape: f32[1,2048], index: 1, kind: output, shape index: {}]  }
   0x1   :  { %7 = vsyncpa [#allocation4], 0  ;;  %s13_s8 = sshll.u32 %s116_s0, 4  ;;  %s98_s9 = smov [#allocation2]   ;;  %s14_s8 = int_to_ptr.hbm [resolvable:$true] %s13_s8 }
   0x2   :  { %s15_s10 = sshll.u32 %s98_s9, 4  ;;  %s16_s10 = int_to_ptr.vmem [resolvable:$true] %s15_s10 }
   0x3   :  { %18 = dma.hbm_to_vmem [thread:$0]  %s14_s8, 256, %s16_s10, [#allocation3]  }
   0x4   :  { %94 = dma.done.wait [#allocation3], 256  }
   0x5   :  { %95 = vsyncadd [#allocation3], 4294967040  ;;  %s99_s11 = smov [#allocation5]   ;;  %s34_s15 = sshll.u32 %s117_s1, 4  ;;  %v23_v0 = vld [vmem:[#allocation2] sm:$0xff]  ;;  %v24_v1 = vld [vmem:[#allocation2 + $0x8] sm:$0xff]  ;;  %s35_s15 = int_to_ptr.hbm [resolvable:$true] %s34_s15 }
   0x6   :  { %s32_s12 = sshll.u32 %s99_s11, 4  ;;  %25 = vst [vmem:[#allocation5] sm:$0xff] %v23_v0  ;;  %s33_s12 = int_to_ptr.vmem [resolvable:$true] %s32_s12 }
   0x7   :  { %26 = vst [vmem:[#allocation5 + $0x8] sm:$0xff] %v24_v1 }
   0x8   :  { %37 = dma.vmem_to_hbm [thread:$0]  %s33_s12, 256, %s35_s15, [#allocation4]  }
   0x9   :  { %96 = dma.done.wait [#allocation4], 256  }
   0xa   :  { %97 = vsyncadd [#allocation4], 4294967040 }
   0xb   :  { %42 = vsyncpa [#allocation3], 1 }
   0xc   :  { %43 = vsyncpa [#allocation4], 1 }

</bundles_post_ra>
